<compile_context>
chip_gen: v7x
topology: tpu7x:2x2x1
jax: 0.10.0
libtpu: 0.0.40
codegen_flags: <defaults>
</compile_context>

<pallas_src>
import functools

import jax
import jax.numpy as jnp
from jax import lax
from jax.experimental import pallas as pl
from jax.experimental.pallas import tpu as pltpu

_LANE = 128


def _vmem_capacity_bytes() -> int:
    """Per-core VMEM capacity; conservative (v7x) default if the query fails."""
    try:
        return int(pltpu.get_tpu_info().vmem_capacity_bytes)
    except Exception:  # query is a tuning hint only; never fail the kernel
        return 64 * 1024 * 1024


def _pick_q_tile(n_pad: int, vmem_cap_bytes: int) -> int:
    """Large tiles on 128 MiB parts (v5e/v6e), tighter tiles on v7x (64 MiB)."""
    candidates = (512, 256, 128) if vmem_cap_bytes >= (96 << 20) else (256, 128)
    for t in candidates:
        if n_pad % t == 0 and n_pad > t:
            return t
    return n_pad


def _mhsa_kernel(x_ref, wq_ref, wkv_ref, wpt_ref, bp_ref, o_ref,
                 kvt_ref, qt_ref, ot_ref, *,
                 num_heads: int, head_dim: int, q_tile: int, n_valid: int):
    # x_ref:    (1, Np, C)  full (padded) sequence for current batch element
    # wq_ref:   (C, C)      q projection, PyTorch (out, in) rows, scale folded in
    # wkv_ref:  (2C, C)     fused k/v projection, PyTorch (out, in) rows
    # wpt_ref:  (C, C)      output projection, transposed to (in, out)
    # bp_ref:   (1, C)      output projection bias (f32)
    # o_ref:    (1, tq, C)  output tile (lane-dense C)
    # kvt_ref:  (2C, Np)    VMEM scratch: K^T rows [0,C), V^T rows [C,2C)
    # qt_ref:   (C, tq)     VMEM scratch: Q^T for the current query tile
    # ot_ref:   (C, tq)     VMEM scratch: per-head attention outputs (transposed)
    qi = pl.program_id(1)
    dtype = x_ref.dtype                      # MXU operand dtype (bf16-friendly)
    n_kv = kvt_ref.shape[1]                  # padded sequence length
    c = x_ref.shape[2]

    # ---- K / V: once per batch element, ONE fused full-width matmul ----------
    @pl.when(qi == 0)
    def _():
        x_all = x_ref[0]                                             # (Np, C)
        kvt = lax.dot_general(wkv_ref[...], x_all,
                              (((1,), (1,)), ((), ())),
                              preferred_element_type=jnp.float32)    # (2C, Np)
        kvt_ref[...] = kvt.astype(kvt_ref.dtype)

    # ---- Q for this query tile: ONE full-width matmul, stored transposed -----
    q_start = pl.multiple_of(qi * q_tile, q_tile)
    x_q = x_ref[0, pl.ds(q_start, q_tile), :]                        # (tq, C)
    qt = lax.dot_general(wq_ref[...], x_q, (((1,), (1,)), ((), ())),
                         preferred_element_type=jnp.float32)         # (C, tq)
    qt_ref[...] = qt.astype(qt_ref.dtype)

    # Key-padding mask (static branch; only emitted when N was padded).
    if n_valid < n_kv:
        key_valid = lax.broadcasted_iota(jnp.int32, (n_kv, q_tile), 0) < n_valid
    else:
        key_valid = None

    # ---- per-head attention: fori_loop bounds live ranges --------------------
    def head_body(h, carry):
        off = pl.multiple_of(h * head_dim, head_dim)
        q_t_h = qt_ref[pl.ds(off, head_dim), :]                      # (hd, tq)
        k_t_h = kvt_ref[pl.ds(off, head_dim), :]                     # (hd, Np)
        v_t_h = kvt_ref[pl.ds(c + off, head_dim), :]                 # (hd, Np)

        # transposed scores: keys on sublanes, queries on lanes -> (Np, tq)
        s_t = lax.dot_general(k_t_h, q_t_h, (((0,), (0,)), ((), ())),
                              preferred_element_type=jnp.float32)
        if key_valid is not None:
            s_t = jnp.where(key_valid, s_t, jnp.float32(-1e30))

        # numerically stable softmax over keys (axis 0), all f32;
        # statistics come out lane-aligned as (1, tq).
        s_t = s_t - jnp.max(s_t, axis=0, keepdims=True)
        p_t = jnp.exp(s_t)
        inv = pl.reciprocal(jnp.sum(p_t, axis=0, keepdims=True), approx=True)

        # PV matmul (contraction over Np) then normalize the SMALL (hd, tq)
        # output (not the (Np, tq) probabilities).
        o_t_h = lax.dot_general(v_t_h, p_t.astype(dtype),
                                (((1,), (0,)), ((), ())),
                                preferred_element_type=jnp.float32)  # (hd, tq)
        o_t_h = o_t_h * inv
        ot_ref[pl.ds(off, head_dim), :] = o_t_h.astype(ot_ref.dtype)
        return carry

    lax.fori_loop(0, num_heads, head_body, 0)

    # ---- output projection: ONE full-depth (contraction = C) matmul ----------
    y = lax.dot_general(ot_ref[...], wpt_ref[...], (((0,), (0,)), ((), ())),
                        preferred_element_type=jnp.float32)          # (tq, C)
    y = y + bp_ref[...]
    o_ref[0] = y.astype(o_ref.dtype)


def prepare_mhsa_params(w_qkv, w_proj, b_proj, *, num_heads: int,
                        qk_scale: float | None = None):
    """One-time host-side parameter preparation (do NOT call per forward).

    w_qkv: (3C, C) PyTorch qkv.weight ; w_proj: (C, C) ; b_proj: (C,)
    Returns (w_q, w_kv, w_p_t, b_p):
      w_q   (C, C)   q rows of qkv.weight with the softmax scale folded in
      w_kv  (2C, C)  k and v rows of qkv.weight (head-fused)
      w_p_t (C, C)   proj.weight transposed to (in, out)
      b_p   (1, C)   proj bias
    """
    three_c, c = w_qkv.shape
    assert three_c == 3 * c
    assert c % num_heads == 0
    hd = c // num_heads
    scale = qk_scale if qk_scale is not None else hd ** (-0.5)

    w_q = w_qkv[:c, :] * jnp.asarray(scale, w_qkv.dtype)   # (C, C)
    w_kv = w_qkv[c:, :]                                    # (2C, C)
    w_p_t = w_proj.T                                       # (C_in, C_out)
    b_p = b_proj.reshape(1, c)
    return w_q, w_kv, w_p_t, b_p


def mhsa_pallas(x, w_q, w_kv, w_p_t, b_p, *, num_heads: int,
                q_tile: int | None = None):
    """x: (B, N, C); params from prepare_mhsa_params. Returns (B, N, C)."""
    B, N, C = x.shape
    assert C % num_heads == 0
    hd = C // num_heads
    assert w_q.shape == (C, C) and w_kv.shape == (2 * C, C)
    assert w_p_t.shape == (C, C) and b_p.shape == (1, C)

    # --- host-side sequence padding to a lane-dense multiple of 128 ----------
    n_pad = ((N + _LANE - 1) // _LANE) * _LANE
    x_in = jnp.pad(x, ((0, 0), (0, n_pad - N), (0, 0))) if n_pad != N else x

    vmem_cap = _vmem_capacity_bytes()
    if q_tile is None:
        q_tile = _pick_q_tile(n_pad, vmem_cap)
    assert n_pad % q_tile == 0 and (q_tile % 8 == 0 or q_tile == n_pad)
    n_q = n_pad // q_tile

    # MXU operands follow x.dtype (pass bf16 x on v6e/v7x for full MXU rate);
    # bias stays f32 (added to the f32 accumulator).
    dtype = x.dtype
    w_q = w_q.astype(dtype)
    w_kv = w_kv.astype(dtype)
    w_p_t = w_p_t.astype(dtype)
    b_p = b_p.astype(jnp.float32)

    # ~48 MiB budget on v7x (64 MiB/TC), ~96 MiB on v5e/v6e (128 MiB).
    vmem_limit = min(vmem_cap * 3 // 4, 100 * 1024 * 1024)

    kernel = functools.partial(_mhsa_kernel, num_heads=num_heads, head_dim=hd,
                               q_tile=q_tile, n_valid=N)

    grid_spec = pltpu.PrefetchScalarGridSpec(
        num_scalar_prefetch=0,
        grid=(B, n_q),
        in_specs=[
            # x stays resident across the query-tile axis (constant block idx).
            pl.BlockSpec((1, n_pad, C), lambda b, q: (b, 0, 0)),
            pl.BlockSpec((C, C), lambda b, q: (0, 0)),
            pl.BlockSpec((2 * C, C), lambda b, q: (0, 0)),
            pl.BlockSpec((C, C), lambda b, q: (0, 0)),
            pl.BlockSpec((1, C), lambda b, q: (0, 0)),
        ],
        out_specs=pl.BlockSpec((1, q_tile, C), lambda b, q: (b, q, 0)),
        scratch_shapes=[
            pltpu.VMEM((2 * C, n_pad), dtype),   # K^T / V^T, head-fused
            pltpu.VMEM((C, q_tile), dtype),      # Q^T for current tile
            pltpu.VMEM((C, q_tile), dtype),      # per-head outputs (transposed)
        ],
    )

    out = pl.pallas_call(
        kernel,
        out_shape=jax.ShapeDtypeStruct((B, n_pad, C), dtype),
        grid_spec=grid_spec,
        compiler_params=pltpu.CompilerParams(
            dimension_semantics=("parallel", "arbitrary"),
            vmem_limit_bytes=vmem_limit,
        ),
    )(x_in, w_q, w_kv, w_p_t, b_p)

    return out[:, :N, :] if n_pad != N else out


def mhsa_reference(x, w_qkv, w_proj, b_proj, *, num_heads: int,
                   qk_scale: float | None = None):
    """Pure-JAX reference mirroring the PyTorch forward (original params)."""
    B, N, C = x.shape
    hd = C // num_heads
    scale = qk_scale if qk_scale is not None else hd ** (-0.5)
    qkv = x @ w_qkv.T                                    # (B, N, 3C)
    qkv = qkv.reshape(B, N, 3, num_heads, hd).transpose(2, 0, 3, 1, 4)
    q, k, v = qkv[0], qkv[1], qkv[2]                     # (B, H, N, hd)
    attn = (q @ k.transpose(0, 1, 3, 2)) * scale
    attn = jax.nn.softmax(attn, axis=-1)
    out = (attn @ v).transpose(0, 2, 1, 3).reshape(B, N, C)
    return out @ w_proj.T + b_proj


if __name__ == "__main__":
    B, N, C = 2, 16, 64
    num_heads = 8

    key = jax.random.PRNGKey(0)
    kx, kqkv, kproj, kb = jax.random.split(key, 4)

    x = jax.random.normal(kx, (B, N, C), dtype=jnp.float32)
    # deterministic synthetic parameters (trunc-normal-ish scale 0.02)
    w_qkv = 0.02 * jax.random.normal(kqkv, (3 * C, C), dtype=jnp.float32)
    w_proj = 0.02 * jax.random.normal(kproj, (C, C), dtype=jnp.float32)
    b_proj = 0.02 * jax.random.normal(kb, (C,), dtype=jnp.float32)

    # One-time host-side parameter prep (head-fused layouts, scale folded in).
    params = prepare_mhsa_params(w_qkv, w_proj, b_proj, num_heads=num_heads)

    y_ref = mhsa_reference(x, w_qkv, w_proj, b_proj, num_heads=num_heads)

    # f32 path, single query tile (N=16 padded to 128, masked softmax).
    y = mhsa_pallas(x, *params, num_heads=num_heads)
    y = jax.block_until_ready(y)
    assert y.shape == (B, N, C)
    # approx reciprocal in the softmax normalization loosens tolerance slightly
    assert jnp.allclose(y, y_ref, atol=5e-3, rtol=5e-3), (
        float(jnp.max(jnp.abs(y - y_ref))))

    # Tiled query path (exercises K/V scratch reuse across query tiles).
    y_tiled = mhsa_pallas(x, *params, num_heads=num_heads, q_tile=64)
    y_tiled = jax.block_until_ready(y_tiled)
    assert jnp.allclose(y_tiled, y_ref, atol=5e-3, rtol=5e-3), (
        float(jnp.max(jnp.abs(y_tiled - y_ref))))

    # bf16 MXU-operand path (recommended on v6e / v7x); softmax stays f32.
    y_bf16 = mhsa_pallas(x.astype(jnp.bfloat16), *params, num_heads=num_heads)
    y_bf16 = jax.block_until_ready(y_bf16).astype(jnp.float32)
    assert jnp.allclose(y_bf16, y_ref, atol=2e-2, rtol=2e-2), (
        float(jnp.max(jnp.abs(y_bf16 - y_ref))))

    print("KERNEL_OK")
</pallas_src>

<mosaic_0001>
module attributes {stable_mosaic.version = 11 : i64} {
  func.func @_mhsa_kernel(%arg0: i32, %arg1: i32, %arg2: memref<1x128x64xf32, #tpu.memory_space<vmem>>, %arg3: memref<64x64xf32, #tpu.memory_space<vmem>>, %arg4: memref<128x64xf32, #tpu.memory_space<vmem>>, %arg5: memref<64x64xf32, #tpu.memory_space<vmem>>, %arg6: memref<1x64xf32, #tpu.memory_space<vmem>>, %arg7: memref<1x128x64xf32, #tpu.memory_space<vmem>>, %arg8: memref<128x128xf32, #tpu.memory_space<vmem>>, %arg9: memref<64x128xf32, #tpu.memory_space<vmem>>, %arg10: memref<64x128xf32, #tpu.memory_space<vmem>>) attributes {dimension_semantics = [#tpu.dimension_semantics<parallel>, #tpu.dimension_semantics<arbitrary>], iteration_bounds = array<i64: 2, 1>, scalar_prefetch = 0 : i64, scratch_operands = 3 : i64, tpu.core_type = #tpu.core_type<tc>, window_params = [{transform_indices = @transform_0, window_bounds = array<i64: 1, 128, 64>}, {pipeline_mode = #tpu.pipeline_mode<synchronous>, transform_indices = @transform_1, window_bounds = array<i64: 64, 64>}, {pipeline_mode = #tpu.pipeline_mode<synchronous>, transform_indices = @transform_2, window_bounds = array<i64: 128, 64>}, {pipeline_mode = #tpu.pipeline_mode<synchronous>, transform_indices = @transform_3, window_bounds = array<i64: 64, 64>}, {pipeline_mode = #tpu.pipeline_mode<synchronous>, transform_indices = @transform_4, window_bounds = array<i64: 1, 64>}, {transform_indices = @transform_5, window_bounds = array<i64: 1, 128, 64>}]} {
    %c0_i32 = arith.constant 0 : i32
    %0 = arith.cmpi eq, %arg1, %c0_i32 : i32
    %1 = arith.extui %0 : i1 to i32
    %c0_i32_0 = arith.constant 0 : i32
    %2 = arith.cmpi ne, %1, %c0_i32_0 : i32
    scf.if %2 {
      %c0_18 = arith.constant 0 : index
      %c0_19 = arith.constant 0 : index
      %c0_20 = arith.constant 0 : index
      %24 = vector.load %arg2[%c0_18, %c0_19, %c0_20] : memref<1x128x64xf32, #tpu.memory_space<vmem>>, vector<1x128x64xf32>
      %25 = vector.shape_cast %24 : vector<1x128x64xf32> to vector<128x64xf32>
      %c0_21 = arith.constant 0 : index
      %c0_22 = arith.constant 0 : index
      %26 = vector.load %arg4[%c0_21, %c0_22] : memref<128x64xf32, #tpu.memory_space<vmem>>, vector<128x64xf32>
      %cst_23 = arith.constant dense<0.000000e+00> : vector<128x128xf32>
      %27 = tpu.matmul %26, %25, %cst_23 {dimension_numbers = #tpu.dot_dimension_numbers<[1], [1], [0], [0], [0, 0, 1, 0], [], []>} : vector<128x64xf32>, vector<128x64xf32>, vector<128x128xf32> -> vector<128x128xf32>
      %c0_24 = arith.constant 0 : index
      %c0_25 = arith.constant 0 : index
      %28 = vector.load %arg8[%c0_24, %c0_25] : memref<128x128xf32, #tpu.memory_space<vmem>>, vector<128x128xf32>
      tpu.vector_store %arg8[%c0_24, %c0_25], %27 {strides = array<i32>} : memref<128x128xf32, #tpu.memory_space<vmem>>, vector<128x128xf32>,
    } else {
    }
    %c128_i32 = arith.constant 128 : i32
    %3 = arith.muli %arg1, %c128_i32 : i32
    %4 = tpu.assume_multiple %3, 128 : i32
    %c0 = arith.constant 0 : index
    %5 = arith.index_cast %4 : i32 to index
    %c0_1 = arith.constant 0 : index
    %6 = vector.load %arg2[%c0, %5, %c0_1] : memref<1x128x64xf32, #tpu.memory_space<vmem>>, vector<1x128x64xf32>
    %7 = vector.shape_cast %6 : vector<1x128x64xf32> to vector<128x64xf32>
    %c0_2 = arith.constant 0 : index
    %c0_3 = arith.constant 0 : index
    %8 = vector.load %arg3[%c0_2, %c0_3] : memref<64x64xf32, #tpu.memory_space<vmem>>, vector<64x64xf32>
    %cst = arith.constant dense<0.000000e+00> : vector<64x128xf32>
    %9 = tpu.matmul %8, %7, %cst {dimension_numbers = #tpu.dot_dimension_numbers<[1], [1], [0], [0], [0, 0, 1, 0], [], []>} : vector<64x64xf32>, vector<128x64xf32>, vector<64x128xf32> -> vector<64x128xf32>
    %c0_4 = arith.constant 0 : index
    %c0_5 = arith.constant 0 : index
    %10 = vector.load %arg9[%c0_4, %c0_5] : memref<64x128xf32, #tpu.memory_space<vmem>>, vector<64x128xf32>
    tpu.vector_store %arg9[%c0_4, %c0_5], %9 {strides = array<i32>} : memref<64x128xf32, #tpu.memory_space<vmem>>, vector<64x128xf32>,
    %11 = tpu.iota {dimensions = array<i32: 0>} : vector<128x128xi32>
    %c16_i32 = arith.constant 16 : i32
    %12 = vector.broadcast %c16_i32 : i32 to vector<128x128xi32>
    %13 = arith.cmpi slt, %11, %12 : vector<128x128xi32>
    %c0_i32_6 = arith.constant 0 : i32
    %c8_i32 = arith.constant 8 : i32
    %14 = arith.addi %c0_i32_6, %c8_i32 : i32
    %c1_i32 = arith.constant 1 : i32
    scf.for %arg11 = %c0_i32_6 to %14 step %c1_i32  : i32 {
      %c8_i32_18 = arith.constant 8 : i32
      %24 = arith.muli %arg11, %c8_i32_18 : i32
      %25 = tpu.assume_multiple %24, 8 : i32
      %26 = arith.index_cast %25 : i32 to index
      %c0_19 = arith.constant 0 : index
      %27 = vector.load %arg9[%26, %c0_19] : memref<64x128xf32, #tpu.memory_space<vmem>>, vector<8x128xf32>
      %28 = arith.index_cast %25 : i32 to index
      %c0_20 = arith.constant 0 : index
      %29 = vector.load %arg8[%28, %c0_20] : memref<128x128xf32, #tpu.memory_space<vmem>>, vector<8x128xf32>
      %c64_i32 = arith.constant 64 : i32
      %30 = arith.addi %c64_i32, %25 : i32
      %31 = arith.index_cast %30 : i32 to index
      %c0_21 = arith.constant 0 : index
      %32 = vector.load %arg8[%31, %c0_21] : memref<128x128xf32, #tpu.memory_space<vmem>>, vector<8x128xf32>
      %cst_22 = arith.constant dense<0.000000e+00> : vector<128x128xf32>
      %33 = tpu.matmul %29, %27, %cst_22 {dimension_numbers = #tpu.dot_dimension_numbers<[0], [0], [1], [1], [0, 1, 1, 1], [], []>} : vector<8x128xf32>, vector<8x128xf32>, vector<128x128xf32> -> vector<128x128xf32>
      %cst_23 = arith.constant -1.000000e+30 : f32
      %34 = vector.broadcast %cst_23 : f32 to vector<128x128xf32>
      %35 = arith.select %13, %33, %34 : vector<128x128xi1>, vector<128x128xf32>
      %cst_24 = arith.constant dense<0xFF800000> : vector<128xf32>
      %36 = vector.multi_reduction <maximumf>, %35, %cst_24 [0] : vector<128x128xf32> to vector<128xf32>
      %37 = vector.shape_cast %36 : vector<128xf32> to vector<1x128xf32>
      %38 = vector.broadcast %37 : vector<1x128xf32> to vector<128x128xf32>
      %39 = arith.subf %35, %38 : vector<128x128xf32>
      %40 = math.exp %39 : vector<128x128xf32>
      %cst_25 = arith.constant dense<0.000000e+00> : vector<128xf32>
      %41 = vector.multi_reduction <add>, %40, %cst_25 [0] : vector<128x128xf32> to vector<128xf32>
      %42 = vector.shape_cast %41 : vector<128xf32> to vector<1x128xf32>
      %43 = tpu.reciprocal %42 {approx = true} : vector<1x128xf32> -> vector<1x128xf32>
      %cst_26 = arith.constant dense<0.000000e+00> : vector<8x128xf32>
      %44 = tpu.matmul %32, %40, %cst_26 {dimension_numbers = #tpu.dot_dimension_numbers<[1], [0], [0], [1], [0, 0, 1, 1], [], []>} : vector<8x128xf32>, vector<128x128xf32>, vector<8x128xf32> -> vector<8x128xf32>
      %45 = vector.broadcast %43 : vector<1x128xf32> to vector<8x128xf32>
      %46 = arith.mulf %44, %45 : vector<8x128xf32>
      %47 = arith.index_cast %25 : i32 to index
      %c0_27 = arith.constant 0 : index
      %48 = vector.load %arg10[%47, %c0_27] : memref<64x128xf32, #tpu.memory_space<vmem>>, vector<8x128xf32>
      tpu.vector_store %arg10[%47, %c0_27], %46 {strides = array<i32>} : memref<64x128xf32, #tpu.memory_space<vmem>>, vector<8x128xf32>,
    }
    %c8_i32_7 = arith.constant 8 : i32
    %c0_8 = arith.constant 0 : index
    %c0_9 = arith.constant 0 : index
    %15 = vector.load %arg10[%c0_8, %c0_9] : memref<64x128xf32, #tpu.memory_space<vmem>>, vector<64x128xf32>
    %c0_10 = arith.constant 0 : index
    %c0_11 = arith.constant 0 : index
    %16 = vector.load %arg5[%c0_10, %c0_11] : memref<64x64xf32, #tpu.memory_space<vmem>>, vector<64x64xf32>
    %cst_12 = arith.constant dense<0.000000e+00> : vector<128x64xf32>
    %17 = tpu.matmul %15, %16, %cst_12 {dimension_numbers = #tpu.dot_dimension_numbers<[0], [0], [1], [1], [0, 1, 1, 1], [], []>} : vector<64x128xf32>, vector<64x64xf32>, vector<128x64xf32> -> vector<128x64xf32>
    %c0_13 = arith.constant 0 : index
    %c0_14 = arith.constant 0 : index
    %18 = vector.load %arg6[%c0_13, %c0_14] : memref<1x64xf32, #tpu.memory_space<vmem>>, vector<1x64xf32>
    %19 = vector.broadcast %18 : vector<1x64xf32> to vector<128x64xf32>
    %20 = arith.addf %17, %19 : vector<128x64xf32>
    %c0_15 = arith.constant 0 : index
    %c0_16 = arith.constant 0 : index
    %c0_17 = arith.constant 0 : index
    %21 = vector.load %arg7[%c0_15, %c0_16, %c0_17] : memref<1x128x64xf32, #tpu.memory_space<vmem>>, vector<1x128x64xf32>
    %22 = vector.shape_cast %21 : vector<1x128x64xf32> to vector<128x64xf32>
    %23 = vector.shape_cast %20 : vector<128x64xf32> to vector<1x128x64xf32>
    tpu.vector_store %arg7[%c0_15, %c0_16, %c0_17], %23 {strides = array<i32>} : memref<1x128x64xf32, #tpu.memory_space<vmem>>, vector<1x128x64xf32>,
    return
  }
  func.func @transform_0(%arg0: i32, %arg1: i32) -> (i32, i32, i32) {
    %c0_i32 = arith.constant 0 : i32
    %c0_i32_0 = arith.constant 0 : i32
    %c0_i32_1 = arith.constant 0 : i32
    return %arg0, %c0_i32, %c0_i32_0 : i32, i32, i32
  }
  func.func @transform_1(%arg0: i32, %arg1: i32) -> (i32, i32) {
    %c0_i32 = arith.constant 0 : i32
    %c0_i32_0 = arith.constant 0 : i32
    %c0_i32_1 = arith.constant 0 : i32
    return %c0_i32, %c0_i32_0 : i32, i32
  }
  func.func @transform_2(%arg0: i32, %arg1: i32) -> (i32, i32) {
    %c0_i32 = arith.constant 0 : i32
    %c0_i32_0 = arith.constant 0 : i32
    %c0_i32_1 = arith.constant 0 : i32
    return %c0_i32, %c0_i32_0 : i32, i32
  }
  func.func @transform_3(%arg0: i32, %arg1: i32) -> (i32, i32) {
    %c0_i32 = arith.constant 0 : i32
    %c0_i32_0 = arith.constant 0 : i32
    %c0_i32_1 = arith.constant 0 : i32
    return %c0_i32, %c0_i32_0 : i32, i32
  }
  func.func @transform_4(%arg0: i32, %arg1: i32) -> (i32, i32) {
    %c0_i32 = arith.constant 0 : i32
    %c0_i32_0 = arith.constant 0 : i32
    %c0_i32_1 = arith.constant 0 : i32
    return %c0_i32, %c0_i32_0 : i32, i32
  }
  func.func @transform_5(%arg0: i32, %arg1: i32) -> (i32, i32, i32) {
    %c0_i32 = arith.constant 0 : i32
    %c0_i32_0 = arith.constant 0 : i32
    return %arg0, %arg1, %c0_i32 : i32, i32, i32
  }
}

</mosaic_0001>

<bundles_post_ra>
// kernel: tpu_custom_call.1
= control target key start
LH: loop header
LB: loop body
LE: loop exit
PB: predicated region body
PF: predicated region fallthrough
CT: control target
= control target key end

     0   :  { %s2241_s18 = smov 0   ;;  %s2243_s19 = smov 0   ;;  %s2577_s0 = inlined_call_operand.vmem [shape: f32[2,128,64], index: 0, kind: input, shape index: {}]   ;;  %s2578_s1 = inlined_call_operand.vmem [shape: f32[64,64], index: 1, kind: input, shape index: {}]   ;;  %s2579_s2 = inlined_call_operand.vmem [shape: f32[128,64], index: 2, kind: input, shape index: {}]   ;;  %s2580_s3 = inlined_call_operand.vmem [shape: f32[64,64], index: 3, kind: input, shape index: {}]   ;;  %s2581_s4 = inlined_call_operand.vmem [shape: f32[1,64], index: 4, kind: input, shape index: {}]   ;;  %s2582_s5 = inlined_call_operand.vmem [shape: f32[2,128,64], index: 5, kind: output, shape index: {}]  }
   0x1   :  { %s2245_s20 = smov 0  }
   0x2 LB: > { %s27_s21 = sadd.s32 1, %s2198_s19  ;;  %p1572_p0 = scmp.ge.s32.totalorder %s2202_s20, 1  ;;  %s2202_s20 = sphi %s2245_s20, %s15_s20   ;;  %s2198_s19 = sphi %s2243_s19, %s2586_s19   ;;  %s2194_s18 = sphi %s2241_s18, %s2585_s18  }
   0x3   : > { %p29_p1 = scmp.ge.s32.totalorder %s27_s21, 2  ;;  %p201_p2 = scmp.lt.s32.totalorder %s2202_s20, 3 }
   0x5   : > { %s2588_s21 = smov (%p29_p1, %s27_s21), 0  ;;  %p202_p3 = pnand %p1572_p0, %p201_p2 }
   0x6   : > { %p233_p4 = scmp.lt.s32.totalorder (!%p202_p3), %s2194_s18, 1  ;;  %vm284_vm0 = vcmask (!%p202_p3), 523264   ;;  %v268_v0 = vld [vmem:[%s2579_s2] sm:$0xff] (!%p202_p3)  ;;  %v269_v27 = vld [vmem:[%s2579_s2 + $0x8] sm:$0xff] (!%p202_p3)  ;;  %v270_v29 = vld [vmem:[%s2579_s2 + $0x10] sm:$0xff] (!%p202_p3)  ;;  %s2451_s10 = smov (!%p202_p3), 0  }
   0x7   : > { %205 = sbr.rel (%p202_p3) target bundleno = 1377 (0x561), region = 40  ;;  %1819 = vmatprep.mubr.msk.f32.mxu0 (!%p202_p3), %vm284_vm0, %v268_v0  ;;  %v560_v1 = vld [vmem:[%s2578_s1] sm:$0xff] (!%p202_p3)  ;;  %vm2279_vm1 = vmpackc.low (!%p202_p3), %vm284_vm0, %vm284_vm0  ;;  %v561_v28 = vld [vmem:[%s2578_s1 + $0x8] sm:$0xff] (!%p202_p3) }
   0x8   : > { %1875 = vmatprep.mubr.msk.f32.mxu1 (!%p202_p3), %vm284_vm0, %v560_v1  ;;  %v562_v30 = vld [vmem:[%s2578_s1 + $0x10] sm:$0xff] (!%p202_p3)  ;;  %v271_v31 = vld [vmem:[%s2579_s2 + $0x18] sm:$0xff] (!%p202_p3)  ;;  %v272_v33 = vld [vmem:[%s2579_s2 + $0x20] sm:$0xff] (!%p202_p3) }
   0x9   : > { %v563_v32 = vld [vmem:[%s2578_s1 + $0x18] sm:$0xff] (!%p202_p3)  ;;  %v564_v34 = vld [vmem:[%s2578_s1 + $0x20] sm:$0xff] (!%p202_p3)  ;;  %v273_v35 = vld [vmem:[%s2579_s2 + $0x28] sm:$0xff] (!%p202_p3) }
   0xa   : > { %v565_v36 = vld [vmem:[%s2578_s1 + $0x28] sm:$0xff] (!%p202_p3)  ;;  %v274_v37 = vld [vmem:[%s2579_s2 + $0x30] sm:$0xff] (!%p202_p3)  ;;  %v275_v39 = vld [vmem:[%s2579_s2 + $0x38] sm:$0xff] (!%p202_p3) }
   0xb   : > { %v566_v38 = vld [vmem:[%s2578_s1 + $0x30] sm:$0xff] (!%p202_p3)  ;;  %v567_v40 = vld [vmem:[%s2578_s1 + $0x38] sm:$0xff] (!%p202_p3)  ;;  %v276_v41 = vld [vmem:[%s2579_s2 + $0x40] sm:$0xff] (!%p202_p3) }
   0xc   : > { %v277_v42 = vld [vmem:[%s2579_s2 + $0x48] sm:$0xff] (!%p202_p3)  ;;  %v278_v43 = vld [vmem:[%s2579_s2 + $0x50] sm:$0xff] (!%p202_p3)  ;;  %v279_v44 = vld [vmem:[%s2579_s2 + $0x58] sm:$0xff] (!%p202_p3) }
   0xd   : > { %v280_v45 = vld [vmem:[%s2579_s2 + $0x60] sm:$0xff] (!%p202_p3)  ;;  %v281_v46 = vld [vmem:[%s2579_s2 + $0x68] sm:$0xff] (!%p202_p3)  ;;  %v282_v47 = vld [vmem:[%s2579_s2 + $0x70] sm:$0xff] (!%p202_p3) }
   0xe   : > { %s2590_s18 = smov (!%p233_p4, %s2194_s18), 1  ;;  %v283_v48 = vld [vmem:[%s2579_s2 + $0x78] sm:$0xff] }
   0xf   : > { %s1671_s26 = sshll.u32 %s2590_s18, 7 }
  0x10   : > { %s2270_s29 = scalar_lea.vmem %s2577_s0, %s1671_s26  ;;  %s2275_s7 = scalar_lea.vmem %s2582_s5, %s1671_s26 }
  0x11   : > { %v252_v3 = vld [vmem:[%s2270_s29] sm:$0xff]  ;;  %v253_v4 = vld [vmem:[%s2270_s29 + $0x8] sm:$0xff]  ;;  %v254_v5 = vld [vmem:[%s2270_s29 + $0x10] sm:$0xff] }
  0x12   : > { %v1988_v6 = vpack.c.bf16 %v253_v4, %v252_v3  ;;  %v255_v7 = vld [vmem:[%s2270_s29 + $0x18] sm:$0xff]  ;;  %v256_v9 = vld [vmem:[%s2270_s29 + $0x20] sm:$0xff]  ;;  %v257_v10 = vld [vmem:[%s2270_s29 + $0x28] sm:$0xff] }
  0x13   : > { %v1994_v8 = vpack.c.bf16 %v255_v7, %v254_v5  ;;  %v2000_v11 = vpack.c.bf16 %v257_v10, %v256_v9  ;;  %v258_v12 = vld [vmem:[%s2270_s29 + $0x30] sm:$0xff]  ;;  %v259_v13 = vld [vmem:[%s2270_s29 + $0x38] sm:$0xff]  ;;  %v260_v15 = vld [vmem:[%s2270_s29 + $0x40] sm:$0xff] }
  0x14   : > { %1990 = vmatprep.subr.msk.bf16.mxu0 %vm2279_vm1, %v1988_v6  ;;  %2038 = vmatprep.subr.msk.bf16.mxu1 %vm2279_vm1, %v1988_v6  ;;  %v2006_v14 = vpack.c.bf16 %v259_v13, %v258_v12  ;;  %v261_v16 = vld [vmem:[%s2270_s29 + $0x48] sm:$0xff]  ;;  %v262_v18 = vld [vmem:[%s2270_s29 + $0x50] sm:$0xff]  ;;  %v263_v19 = vld [vmem:[%s2270_s29 + $0x58] sm:$0xff] }
  0x15   : > { %1993 = vmatpush3.bf16.xpose.msk.msra.mxu0 %vm2279_vm1, %v1988_v6  ;;  %2041 = vmatpush3.bf16.xpose.msk.msra.mxu1 %vm2279_vm1, %v1988_v6  ;;  %v2012_v17 = vpack.c.bf16 %v261_v16, %v260_v15  ;;  %v2018_v20 = vpack.c.bf16 %v263_v19, %v262_v18  ;;  %v264_v21 = vld [vmem:[%s2270_s29 + $0x60] sm:$0xff]  ;;  %v265_v22 = vld [vmem:[%s2270_s29 + $0x68] sm:$0xff]  ;;  %v266_v24 = vld [vmem:[%s2270_s29 + $0x70] sm:$0xff] }
  0x16   : > { %1996 = vmatprep.subr.msk.bf16.mxu0 %vm2279_vm1, %v1994_v8  ;;  %2044 = vmatprep.subr.msk.bf16.mxu1 %vm2279_vm1, %v1994_v8  ;;  %v2024_v23 = vpack.c.bf16 %v265_v22, %v264_v21  ;;  %v267_v25 = vld [vmem:[%s2270_s29 + $0x78] sm:$0xff] }
  0x17   : > { %v2030_v26 = vpack.c.bf16 %v267_v25, %v266_v24 }
  0x1d   : > { %1999 = vmatpush3.bf16.xpose.msk.msra.mxu0 %vm2279_vm1, %v1994_v8  ;;  %2047 = vmatpush3.bf16.xpose.msk.msra.mxu1 %vm2279_vm1, %v1994_v8 }
  0x1e   : > { %2002 = vmatprep.subr.msk.bf16.mxu0 %vm2279_vm1, %v2000_v11  ;;  %2050 = vmatprep.subr.msk.bf16.mxu1 %vm2279_vm1, %v2000_v11 }
  0x25   : > { %2005 = vmatpush3.bf16.xpose.msk.msra.mxu0 %vm2279_vm1, %v2000_v11  ;;  %2053 = vmatpush3.bf16.xpose.msk.msra.mxu1 %vm2279_vm1, %v2000_v11 }
  0x26   : > { %2008 = vmatprep.subr.msk.bf16.mxu0 %vm2279_vm1, %v2006_v14  ;;  %2056 = vmatprep.subr.msk.bf16.mxu1 %vm2279_vm1, %v2006_v14 }
  0x2d   : > { %2011 = vmatpush3.bf16.xpose.msk.msra.mxu0 %vm2279_vm1, %v2006_v14  ;;  %2059 = vmatpush3.bf16.xpose.msk.msra.mxu1 %vm2279_vm1, %v2006_v14 }
  0x2e   : > { %2014 = vmatprep.subr.msk.bf16.mxu0 %vm2279_vm1, %v2012_v17  ;;  %2062 = vmatprep.subr.msk.bf16.mxu1 %vm2279_vm1, %v2012_v17 }
  0x35   : > { %2017 = vmatpush3.bf16.xpose.msk.msra.mxu0 %vm2279_vm1, %v2012_v17  ;;  %2065 = vmatpush3.bf16.xpose.msk.msra.mxu1 %vm2279_vm1, %v2012_v17 }
  0x36   : > { %2020 = vmatprep.subr.msk.bf16.mxu0 %vm2279_vm1, %v2018_v20  ;;  %2068 = vmatprep.subr.msk.bf16.mxu1 %vm2279_vm1, %v2018_v20 }
  0x3d   : > { %2023 = vmatpush3.bf16.xpose.msk.msra.mxu0 %vm2279_vm1, %v2018_v20  ;;  %2071 = vmatpush3.bf16.xpose.msk.msra.mxu1 %vm2279_vm1, %v2018_v20 }
  0x3e   : > { %2026 = vmatprep.subr.msk.bf16.mxu0 %vm2279_vm1, %v2024_v23  ;;  %2074 = vmatprep.subr.msk.bf16.mxu1 %vm2279_vm1, %v2024_v23 }
  0x45   : > { %2029 = vmatpush3.bf16.xpose.msk.msra.mxu0 %vm2279_vm1, %v2024_v23  ;;  %2077 = vmatpush3.bf16.xpose.msk.msra.mxu1 %vm2279_vm1, %v2024_v23 }
  0x46   : > { %2032 = vmatprep.subr.msk.bf16.mxu0 %vm2279_vm1, %v2030_v26  ;;  %2080 = vmatprep.subr.msk.bf16.mxu1 %vm2279_vm1, %v2030_v26 }
  0x4d   : > { %2035 = vmatpush3.bf16.xpose.msk.msra.mxu0 %vm2279_vm1, %v2030_v26  ;;  %2083 = vmatpush3.bf16.xpose.msk.msra.mxu1 %vm2279_vm1, %v2030_v26 }
  0x54   : > { %1820 = vmatmul.mubr.msk.f32.vlgmr.msra.gmra.mrb[0].mxu0 %vm284_vm0, %v269_v27  ;;  %1876 = vmatmul.mubr.msk.f32.vlgmr.msra.gmra.mrb[0].mxu1 %vm284_vm0, %v561_v28 }
  0x55   : > { %1822 = vmatprep.mubr.msk.f32.mxu0 %vm284_vm0, %v270_v29  ;;  %1878 = vmatprep.mubr.msk.f32.mxu1 %vm284_vm0, %v562_v30 }
  0x58   : > { %1823 = vmatmul.mubr.msk.f32.gmra.mrb[2].mxu0 %vm284_vm0, %v271_v31  ;;  %1879 = vmatmul.mubr.msk.f32.gmra.mrb[2].mxu1 %vm284_vm0, %v563_v32 }
  0x59   : > { %1825 = vmatprep.mubr.msk.f32.mxu0 %vm284_vm0, %v272_v33  ;;  %1881 = vmatprep.mubr.msk.f32.mxu1 %vm284_vm0, %v564_v34 }
  0x5c   : > { %1826 = vmatmul.mubr.msk.f32.gmra.mrb[4].mxu0 %vm284_vm0, %v273_v35  ;;  %1882 = vmatmul.mubr.msk.f32.gmra.mrb[4].mxu1 %vm284_vm0, %v565_v36 }
  0x5d   : > { %1828 = vmatprep.mubr.msk.f32.mxu0 %vm284_vm0, %v274_v37  ;;  %1884 = vmatprep.mubr.msk.f32.mxu1 %vm284_vm0, %v566_v38 }
  0x60   : > { %1829 = vmatmul.mubr.msk.f32.gmra.mrb[6].mxu0 %vm284_vm0, %v275_v39  ;;  %1885 = vmatmul.mubr.msk.f32.gmra.mrb[6].mxu1 %vm284_vm0, %v567_v40 }
  0x61   : > { %1831 = vmatprep.mubr.msk.f32.mxu0 %vm284_vm0, %v276_v41 }
  0x64   : > { %1832 = vmatmul.mubr.msk.f32.gmra.mrb[8].mxu0 %vm284_vm0, %v277_v42 }
  0x65   : > { %1834 = vmatprep.mubr.msk.f32.mxu0 %vm284_vm0, %v278_v43 }
  0x68   : > { %1835 = vmatmul.mubr.msk.f32.gmra.mrb[10].mxu0 %vm284_vm0, %v279_v44 }
  0x69   : > { %1837 = vmatprep.mubr.msk.f32.mxu0 %vm284_vm0, %v280_v45 }
  0x6c   : > { %1838 = vmatmul.mubr.msk.f32.gmra.mrb[12].mxu0 %vm284_vm0, %v281_v46 }
  0x6d   : > { %1840 = vmatprep.mubr.msk.f32.mxu0 %vm284_vm0, %v282_v47 }
  0x70   : > { %1841 = vmatmul.mubr.msk.f32.gmra.mrb[14].mxu0 %vm284_vm0, %v283_v48 }
 0x127   : > { %v1821_v49 = vpop.f32.mrb[0].mxu0  ;;  %v1877_v50 = vpop.f32.mrb[0].mxu1 }
 0x128   : > { %527 = vst [vmem:[#allocation2 + $0x8] sm:$0xff] %v1821_v49  ;;  %v447_v51 = vpop.f32.mrb[1].mxu0  ;;  %747 = vst [vmem:[#allocation3 + $0x8] sm:$0xff] %v1877_v50  ;;  %v707_v52 = vpop.f32.mrb[1].mxu1 }
 0x129   : > { %526 = vst [vmem:[#allocation2] sm:$0xff] %v447_v51  ;;  %746 = vst [vmem:[#allocation3] sm:$0xff] %v707_v52 }
 0x12b   : > { %v1824_v53 = vpop.f32.mrb[2].mxu0  ;;  %v1880_v54 = vpop.f32.mrb[2].mxu1 }
 0x12c   : > { %529 = vst [vmem:[#allocation2 + $0x18] sm:$0xff] %v1824_v53  ;;  %v457_v55 = vpop.f32.mrb[3].mxu0  ;;  %749 = vst [vmem:[#allocation3 + $0x18] sm:$0xff] %v1880_v54  ;;  %v717_v56 = vpop.f32.mrb[3].mxu1 }
 0x12d   : > { %528 = vst [vmem:[#allocation2 + $0x10] sm:$0xff] %v457_v55  ;;  %748 = vst [vmem:[#allocation3 + $0x10] sm:$0xff] %v717_v56 }
 0x12f   : > { %v1827_v57 = vpop.f32.mrb[4].mxu0  ;;  %v1883_v58 = vpop.f32.mrb[4].mxu1 }
 0x130   : > { %531 = vst [vmem:[#allocation2 + $0x28] sm:$0xff] %v1827_v57  ;;  %v467_v59 = vpop.f32.mrb[5].mxu0  ;;  %751 = vst [vmem:[#allocation3 + $0x28] sm:$0xff] %v1883_v58  ;;  %v727_v60 = vpop.f32.mrb[5].mxu1 }
 0x131   : > { %530 = vst [vmem:[#allocation2 + $0x20] sm:$0xff] %v467_v59  ;;  %750 = vst [vmem:[#allocation3 + $0x20] sm:$0xff] %v727_v60 }
 0x133   : > { %v1830_v61 = vpop.f32.mrb[6].mxu0  ;;  %v1886_v62 = vpop.f32.mrb[6].mxu1 }
 0x134   : > { %533 = vst [vmem:[#allocation2 + $0x38] sm:$0xff] %v1830_v61  ;;  %v477_v63 = vpop.f32.mrb[7].mxu0  ;;  %753 = vst [vmem:[#allocation3 + $0x38] sm:$0xff] %v1886_v62  ;;  %v737_v0 = vpop.f32.mrb[7].mxu1 }
 0x135   : > { %532 = vst [vmem:[#allocation2 + $0x30] sm:$0xff] %v477_v63  ;;  %752 = vst [vmem:[#allocation3 + $0x30] sm:$0xff] %v737_v0 }
 0x137   : > { %v1833_v1 = vpop.f32.mrb[8].mxu0 }
 0x138   : > { %535 = vst [vmem:[#allocation2 + $0x48] sm:$0xff] %v1833_v1  ;;  %v487_v2 = vpop.f32.mrb[9].mxu0 }
 0x139   : > { %534 = vst [vmem:[#allocation2 + $0x40] sm:$0xff] %v487_v2 }
 0x13b   : > { %v1836_v3 = vpop.f32.mrb[10].mxu0 }
 0x13c   : > { %537 = vst [vmem:[#allocation2 + $0x58] sm:$0xff] %v1836_v3  ;;  %v497_v4 = vpop.f32.mrb[11].mxu0 }
 0x13d   : > { %536 = vst [vmem:[#allocation2 + $0x50] sm:$0xff] %v497_v4 }
 0x13f   : > { %v1839_v5 = vpop.f32.mrb[12].mxu0 }
 0x140   : > { %539 = vst [vmem:[#allocation2 + $0x68] sm:$0xff] %v1839_v5  ;;  %v507_v6 = vpop.f32.mrb[13].mxu0 }
 0x141   : > { %538 = vst [vmem:[#allocation2 + $0x60] sm:$0xff] %v507_v6 }
 0x143   : > { %v1842_v7 = vpop.f32.mrb[14].mxu0 }
 0x144   : > { %541 = vst [vmem:[#allocation2 + $0x78] sm:$0xff] %v1842_v7  ;;  %v517_v8 = vpop.f32.mrb[15].mxu0 }
 0x145   : > { %540 = vst [vmem:[#allocation2 + $0x70] sm:$0xff] %v517_v8 }
 0x146 LB: >> { %s2457_s11 = sshll.u32 %s2206_s10, 3  ;;  %vm833_vm2 = vcmask 64512   ;;  %v2208_v18 = vmov 0.0|0.0   ;;  %vm2209_vm3 = vmmov 0   ;;  %v2210_v27 = vmov 0.0   ;;  %s792_s10 = sadd.s32 1, %s2206_s10   ;;  %s2206_s10 = sphi %s2451_s10, %s792_s10  }
 0x147   : >> { %s796_s12 = scalar_lea.vmem [#allocation2], %s2457_s11  ;;  %s794_s13 = scalar_lea.vmem [#allocation3], %s2457_s11  ;;  %2084 = vmatprep.subr.bf16.mxu1 %v2208_v18  ;;  %1945 = vmatprep.mubr.msk.f32.mxu1 %vm2209_vm3, %v2210_v27 }
 0x148   : >> { %v795_v10 = vld [vmem:[%s794_s13] sm:$0xff]  ;;  %s1205_s14 = scalar_lea.vmem [#allocation4], %s2457_s11  ;;  %p789_p5 = scmp.ge.s32.totalorder %s792_s10, 8  }
 0x149   : >> { %1887 = vmatprep.subr.mxu0 %v795_v10 }
 0x14a   : >> { %1888 = vmatpush3.msra.mxu0 %v795_v10 }
 0x14c   : >> { %v797_v9 = vld [vmem:[%s796_s12] sm:$0xff] }
 0x14d   : >> { %801 = vxpose.xlu0.b32.start.end [1/1] (short) %v797_v9, 128  ;;  %v1635_v7 = vld [vmem:[%s796_s12 + $0x40] sm:$0xff] }
 0x1cd   : >> { %v817_v11 = vpop.trf.xlu0 }
 0x1ce   : >> { %1889 = vmatprep.mubr.msk.f32.mxu0 %vm833_vm2, %v817_v11 }
 0x1d1   : >> { %v818_v12 = vpop.trf.xlu0 }
 0x1d2   : >> { %1890 = vmatmul.mubr.msk.f32.vlgmr.msra.gmra.mrb[0].mxu0 %vm833_vm2, %v818_v12 }
 0x1d5   : >> { %v819_v13 = vpop.trf.xlu0 }
 0x1d6   : >> { %1892 = vmatprep.mubr.msk.f32.mxu0 %vm833_vm2, %v819_v13 }
 0x1d9   : >> { %v820_v14 = vpop.trf.xlu0 }
 0x1da   : >> { %1893 = vmatmul.mubr.msk.f32.gmra.mrb[2].mxu0 %vm833_vm2, %v820_v14 }
 0x1dd   : >> { %v821_v15 = vpop.trf.xlu0 }
 0x1de   : >> { %1895 = vmatprep.mubr.msk.f32.mxu0 %vm833_vm2, %v821_v15 }
 0x1e1   : >> { %v822_v16 = vpop.trf.xlu0 }
 0x1e2   : >> { %1896 = vmatmul.mubr.msk.f32.gmra.mrb[4].mxu0 %vm833_vm2, %v822_v16 }
 0x1e5   : >> { %v823_v17 = vpop.trf.xlu0 }
 0x1e6   : >> { %1898 = vmatprep.mubr.msk.f32.mxu0 %vm833_vm2, %v823_v17 }
 0x1e9   : >> { %v824_v19 = vpop.trf.xlu0 }
 0x1ea   : >> { %1899 = vmatmul.mubr.msk.f32.gmra.mrb[6].mxu0 %vm833_vm2, %v824_v19 }
 0x1ed   : >> { %v825_v20 = vpop.trf.xlu0 }
 0x1ee   : >> { %1901 = vmatprep.mubr.msk.f32.mxu0 %vm833_vm2, %v825_v20 }
 0x1f1   : >> { %v826_v21 = vpop.trf.xlu0 }
 0x1f2   : >> { %1902 = vmatmul.mubr.msk.f32.gmra.mrb[8].mxu0 %vm833_vm2, %v826_v21 }
 0x1f5   : >> { %v827_v22 = vpop.trf.xlu0 }
 0x1f6   : >> { %1904 = vmatprep.mubr.msk.f32.mxu0 %vm833_vm2, %v827_v22 }
 0x1f9   : >> { %v828_v23 = vpop.trf.xlu0 }
 0x1fa   : >> { %1905 = vmatmul.mubr.msk.f32.gmra.mrb[10].mxu0 %vm833_vm2, %v828_v23 }
 0x1fd   : >> { %v829_v24 = vpop.trf.xlu0 }
 0x1fe   : >> { %1907 = vmatprep.mubr.msk.f32.mxu0 %vm833_vm2, %v829_v24 }
 0x201   : >> { %v830_v25 = vpop.trf.xlu0 }
 0x202   : >> { %1908 = vmatmul.mubr.msk.f32.gmra.mrb[12].mxu0 %vm833_vm2, %v830_v25 }
 0x205   : >> { %v831_v26 = vpop.trf.xlu0 }
 0x206   : >> { %1910 = vmatprep.mubr.msk.f32.mxu0 %vm833_vm2, %v831_v26 }
 0x209   : >> { %v832_v28 = vpop.trf.xlu0 }
 0x20a   : >> { %1911 = vmatmul.mubr.msk.f32.gmra.mrb[14].mxu0 %vm833_vm2, %v832_v28 }
 0x2a5   : >> { %v1891_v29 = vpop.f32.mrb[0].mxu0 }
 0x2a6   : >> { %v1044_v30 = vmax.f32 %v1891_v29, -1e+30  ;;  %v948_v31 = vpop.f32.mrb[1].mxu0 }
 0x2a7   : >> { %v1043_v32 = vmax.f32 %v948_v31, -1e+30 }
 0x2a8   : >> { %v1048_v33 = vmax.f32 %v1044_v30, -1e+30 }
 0x2a9   : >> { %v1047_v34 = vmax.f32 %v1043_v32, -1e+30 }
 0x2aa   : >> { %v1052_v35 = vmax.f32 %v1048_v33, -1e+30 }
 0x2ab   : >> { %v1051_v36 = vmax.f32 %v1047_v34, -1e+30  ;;  %v1215_v34 = vld [vmem:[%s2580_s3] sm:$0xff] (%p789_p5) }
 0x2ad   : >> { %v1055_v37 = vmax.f32 %v1051_v36, %v1052_v35  ;;  %v1894_v8 = vpop.f32.mrb[2].mxu0  ;;  %v1216_v35 = vld [vmem:[%s2580_s3 + $0x8] sm:$0xff] (%p789_p5)  ;;  %v1217_v36 = vld [vmem:[%s2580_s3 + $0x10] sm:$0xff] (%p789_p5) }
 0x2ae   : >> { %v958_v9 = vpop.f32.mrb[3].mxu0 }
 0x2af   : >> { %v1057_v38 = vmax.f32 %v1055_v37, -1e+30  ;;  %v1218_v37 = vld [vmem:[%s2580_s3 + $0x18] sm:$0xff] (%p789_p5) }
 0x2b1   : >> { %v1058_v39 = vrot.slane %v1057_v38, 4 }
 0x2b3   : >> { %v1059_v40 = vmax.f32 %v1057_v38, %v1058_v39  ;;  %v2108_v38 = vpack.c.bf16 (%p789_p5), %v1216_v35, %v1215_v34  ;;  %v2112_v39 = vpack.c.bf16 (%p789_p5), %v1218_v37, %v1217_v36 }
 0x2b5   : >> { %v1060_v41 = vrot.slane %v1059_v40, 2  ;;  %v1897_v10 = vpop.f32.mrb[4].mxu0  ;;  %2109 = vmatprep.subr.bf16.mxu0 (%p789_p5), %v2108_v38 }
 0x2b6   : >> { %v968_v11 = vpop.f32.mrb[5].mxu0  ;;  %2111 = vmatpush3.bf16.msra.mxu0 (%p789_p5), %v2108_v38 }
 0x2b7   : >> { %v1061_v42 = vmax.f32 %v1059_v40, %v1060_v41  ;;  %v1219_v40 = vld [vmem:[%s2580_s3 + $0x20] sm:$0xff] (%p789_p5)  ;;  %v1220_v41 = vld [vmem:[%s2580_s3 + $0x28] sm:$0xff] (%p789_p5)  ;;  %2113 = vmatprep.subr.bf16.mxu0 (%p789_p5), %v2112_v39 }
 0x2b9   : >> { %v1062_v43 = vrot.slane %v1061_v42, 1 }
 0x2ba   : > { %2115 = vmatpush3.bf16.msra.mxu0 (%p789_p5), %v2112_v39 }
 0x2bb   : >> { %v1063_v44 = vmax.f32 %v1061_v42, %v1062_v43  ;;  %v2116_v43 = vpack.c.bf16 (%p789_p5), %v1220_v41, %v1219_v40 }
 0x2bd   : >> { %v1064_v45 = vsub.f32 %v948_v31, %v1063_v44  ;;  %v1065_v46 = vsub.f32 %v1891_v29, %v1063_v44  ;;  %v1066_v47 = vsub.f32 -1e+30, %v1063_v44  ;;  %v1900_v12 = vpop.f32.mrb[6].mxu0  ;;  %v1221_v44 = vld [vmem:[%s2580_s3 + $0x30] sm:$0xff] (%p789_p5)  ;;  %2117 = vmatprep.subr.bf16.mxu0 (%p789_p5), %v2116_v43 }
 0x2be   : >> { %v978_v13 = vpop.f32.mrb[7].mxu0  ;;  %2119 = vmatpush3.bf16.msra.mxu0 (%p789_p5), %v2116_v43 }
 0x2bf   : >> { %v1080_v48 = vmul.f32 1.442695, %v1064_v45  ;;  %v1082_v49 = vmul.f32 1.442695, %v1065_v46  ;;  %v1084_v50 = vmul.f32 1.442695, %v1066_v47 }
 0x2c0   : > { %v1222_v45 = vld [vmem:[%s2580_s3 + $0x38] sm:$0xff] (%p789_p5) }
 0x2c1   : >> { %2168 = vpow2.f32 %v1080_v48  ;;  %v2120_v47 = vpack.c.bf16 (%p789_p5), %v1222_v45, %v1221_v44 }
 0x2c2   : >> { %2170 = vpow2.f32 %v1082_v49 }
 0x2c3   : >> { %2172 = vpow2.f32 %v1084_v50  ;;  %2121 = vmatprep.subr.bf16.mxu0 (%p789_p5), %v2120_v47 }
 0x2c4   : > { %2123 = vmatpush3.bf16.msra.mxu0 (%p789_p5), %v2120_v47 }
 0x2c5   : >> { %v1903_v14 = vpop.f32.mrb[8].mxu0 }
 0x2c6   : >> { %v988_v15 = vpop.f32.mrb[9].mxu0 }
 0x2cb   : >> { %v2169_v51 = vpop.eup %2168 }
 0x2cc   : >> { %v2171_v52 = vpop.eup %2170 }
 0x2cd   : >> { %v1112_v53 = vadd.f32 %v2171_v52, %v2169_v51  ;;  %v2085_v54 = vpack.c.bf16 %v2171_v52, %v2169_v51  ;;  %v2173_v55 = vpop.eup %2172  ;;  %v1906_v16 = vpop.f32.mrb[10].mxu0 }
 0x2ce   : >> { %v2088_v58 = vpack.c.bf16 %v2173_v55, %v2173_v55  ;;  %v998_v17 = vpop.f32.mrb[11].mxu0 }
 0x2cf   : >> { %v1113_v56 = vadd.f32 %v2173_v55, %v1112_v53  ;;  %2086 = vmatpush3.bf16.msra.mxu1 %v2085_v54 }
 0x2d0   : >> { %2087 = vmatprep.subr.bf16.mxu1 %v2208_v18 }
 0x2d1   : >> { %v1114_v57 = vadd.f32 %v2173_v55, %v1113_v56 }
 0x2d3   : >> { %v1115_v59 = vadd.f32 %v2173_v55, %v1114_v57  ;;  %2089 = vmatpush3.bf16.msra.mxu1 %v2088_v58 }
 0x2d4   : >> { %2090 = vmatprep.subr.bf16.mxu1 %v2208_v18 }
 0x2d5   : >> { %v1116_v60 = vadd.f32 %v2173_v55, %v1115_v59  ;;  %v1909_v19 = vpop.f32.mrb[12].mxu0 }
 0x2d6   : >> { %v1008_v20 = vpop.f32.mrb[13].mxu0 }
 0x2d7   : >> { %v1117_v61 = vadd.f32 %v2173_v55, %v1116_v60  ;;  %2092 = vmatpush3.bf16.msra.mxu1 %v2088_v58 }
 0x2d8   : >> { %2093 = vmatprep.subr.bf16.mxu1 %v2208_v18 }
 0x2d9   : >> { %v1118_v62 = vadd.f32 %v2173_v55, %v1117_v61 }
 0x2db   : >> { %v1119_v63 = vadd.f32 %v2173_v55, %v1118_v62  ;;  %2095 = vmatpush3.bf16.msra.mxu1 %v2088_v58 }
 0x2dc   : >> { %2096 = vmatprep.subr.bf16.mxu1 %v2208_v18 }
 0x2dd   : >> { %v1120_v0 = vadd.f32 %v2173_v55, %v1119_v63  ;;  %v1912_v21 = vpop.f32.mrb[14].mxu0 }
 0x2df   : >> { %2098 = vmatpush3.bf16.msra.mxu1 %v2088_v58  ;;  %v1121_v1 = vadd.f32 %v2173_v55, %v1120_v0 }
 0x2e0   : >> { %2099 = vmatprep.subr.bf16.mxu1 %v2208_v18 }
 0x2e1   : >> { %v1122_v2 = vadd.f32 %v2173_v55, %v1121_v1 }
 0x2e3   : >> { %2101 = vmatpush3.bf16.msra.mxu1 %v2088_v58  ;;  %v1123_v3 = vadd.f32 %v2173_v55, %v1122_v2 }
 0x2e4   : >> { %2102 = vmatprep.subr.bf16.mxu1 %v2208_v18 }
 0x2e5   : >> { %v1124_v4 = vadd.f32 %v2173_v55, %v1123_v3 }
 0x2e7   : >> { %2104 = vmatpush3.bf16.msra.mxu1 %v2088_v58  ;;  %v1125_v5 = vadd.f32 %v2173_v55, %v1124_v4  ;;  %v1652_v4 = vld [vmem:[%s2581_s4] ss:$0 sm:$0xff] (%p789_p5) }
 0x2e8   : >> { %2105 = vmatprep.subr.bf16.mxu1 %v2208_v18  ;;  %v1018_v18 = vpop.f32.mrb[15].mxu0 }
 0x2e9   : >> { %v1126_v6 = vadd.f32 %v2173_v55, %v1125_v5 }
 0x2eb   : >> { %2107 = vmatpush3.bf16.msra.mxu1 %v2088_v58  ;;  %v1127_v22 = vrot.slane %v1126_v6, 4 }
 0x2ec   : > { %2124 = vmatprep.subr.bf16.mxu1 (%p789_p5), %v2108_v38 }
 0x2ed   : >> { %v1128_v23 = vadd.f32 %v1127_v22, %v1126_v6 }
 0x2ee   : >> { %1946 = vmatmul.mubr.f32.vlgmr.msra.gmra.mrb[0].mxu1 %v1635_v7 }
 0x2ef   : >> { %v1129_v24 = vrot.slane %v1128_v23, 2  ;;  %2128 = vmatpush3.bf16.msra.mxu1 (%p789_p5), %v2108_v38 }
 0x2f0   : > { %2125 = vmatprep.subr.bf16.mxu1 (%p789_p5), %v2112_v39 }
 0x2f1   : >> { %v1130_v25 = vadd.f32 %v1129_v24, %v1128_v23 }
 0x2f3   : >> { %v1131_v26 = vrot.slane %v1130_v25, 1  ;;  %2129 = vmatpush3.bf16.msra.mxu1 (%p789_p5), %v2112_v39 }
 0x2f4   : > { %2126 = vmatprep.subr.bf16.mxu1 (%p789_p5), %v2116_v43 }
 0x2f5   : >> { %v1132_v27 = vadd.f32 %v1131_v26, %v1130_v25 }
 0x2f7   : >> { %2174 = vrcp.f32 %v1132_v27  ;;  %2130 = vmatpush3.bf16.msra.mxu1 (%p789_p5), %v2116_v43 }
 0x2f8   : > { %2127 = vmatprep.subr.bf16.mxu1 (%p789_p5), %v2120_v47 }
 0x2fb   : > { %2131 = vmatpush3.bf16.msra.mxu1 (%p789_p5), %v2120_v47 }
 0x301   : >> { %v2175_v28 = vpop.eup %2174 }
 0x3be   : > { %791 = sbr.rel (!%p789_p5) target bundleno = 326 (0x146), region = 86 }
 0x3c1   : >> { %v1200_v29 = vpop.f32.mrb[0].mxu1 }
 0x3c2   : >> { %v1204_v30 = vmul.f32 %v2175_v28, %v1200_v29  ;;  %v1947_v31 = vpop.f32.mrb[1].mxu1 }
 0x3c4   : >> { %1206 = vst [vmem:[%s1205_s14] sm:$0xff] %v1204_v30 }
 0x3cb   : > { %v1207_v32 = vld [vmem:[#allocation4] sm:$0xff]  ;;  %v1208_v33 = vld [vmem:[#allocation4 + $0x8] sm:$0xff]  ;;  %v1209_v42 = vld [vmem:[#allocation4 + $0x10] sm:$0xff] }
 0x3cc   : > { %1230 = vxpose.xlu0.b32.start [1/8] (short) %v1207_v32, 128  ;;  %v1210_v46 = vld [vmem:[#allocation4 + $0x18] sm:$0xff]  ;;  %v1211_v48 = vld [vmem:[#allocation4 + $0x20] sm:$0xff]  ;;  %v1212_v49 = vld [vmem:[#allocation4 + $0x28] sm:$0xff] }
 0x3cd   : > { %v1213_v50 = vld [vmem:[#allocation4 + $0x30] sm:$0xff]  ;;  %v1214_v51 = vld [vmem:[#allocation4 + $0x38] sm:$0xff] }
 0x3d0   : > { %1231 = vxpose.xlu0.b32.cont [2/8] (short) %v1208_v33, 128 }
 0x3d4   : > { %1232 = vxpose.xlu0.b32.cont [3/8] (short) %v1209_v42, 128 }
 0x3d8   : > { %1233 = vxpose.xlu0.b32.cont [4/8] (short) %v1210_v46, 128 }
 0x3dc   : > { %1234 = vxpose.xlu0.b32.cont [5/8] (short) %v1211_v48, 128 }
 0x3e0   : > { %1235 = vxpose.xlu0.b32.cont [6/8] (short) %v1212_v49, 128 }
 0x3e4   : > { %1236 = vxpose.xlu0.b32.cont [7/8] (short) %v1213_v50, 128 }
 0x3e8   : > { %1237 = vxpose.xlu0.b32.end [8/8] (short) %v1214_v51, 128 }
 0x44c   : > { %v1246_v52 = vpop.trf.xlu0 }
 0x44d   : > { %1964 = vmatprep.mubr.msk.f32.mxu0 %vm284_vm0, %v1246_v52 }
 0x450   : > { %v1247_v53 = vpop.trf.xlu0 }
 0x451   : > { %1965 = vmatmul.mubr.msk.f32.vlgmr.msra.gmra.mrb[0].mxu0 %vm284_vm0, %v1247_v53 }
 0x454   : > { %v1248_v54 = vpop.trf.xlu0 }
 0x455   : > { %1967 = vmatprep.mubr.msk.f32.mxu0 %vm284_vm0, %v1248_v54 }
 0x458   : > { %v1249_v55 = vpop.trf.xlu0 }
 0x459   : > { %1968 = vmatmul.mubr.msk.f32.gmra.mrb[2].mxu0 %vm284_vm0, %v1249_v55 }
 0x45c   : > { %v1250_v56 = vpop.trf.xlu0 }
 0x45d   : > { %1970 = vmatprep.mubr.msk.f32.mxu0 %vm284_vm0, %v1250_v56 }
 0x460   : > { %v1251_v57 = vpop.trf.xlu0 }
 0x461   : > { %1971 = vmatmul.mubr.msk.f32.gmra.mrb[4].mxu0 %vm284_vm0, %v1251_v57 }
 0x464   : > { %v1252_v58 = vpop.trf.xlu0 }
 0x465   : > { %1973 = vmatprep.mubr.msk.f32.mxu0 %vm284_vm0, %v1252_v58 }
 0x468   : > { %v1253_v59 = vpop.trf.xlu0 }
 0x469   : > { %1974 = vmatmul.mubr.msk.f32.gmra.mrb[6].mxu0 %vm284_vm0, %v1253_v59 }
 0x46c   : > { %v1254_v60 = vpop.trf.xlu0 }
 0x46d   : > { %1976 = vmatprep.mubr.msk.f32.mxu1 %vm284_vm0, %v1254_v60 }
 0x470   : > { %v1255_v61 = vpop.trf.xlu0 }
 0x471   : > { %1977 = vmatmul.mubr.msk.f32.vlgmr.msra.gmra.mrb[0].mxu1 %vm284_vm0, %v1255_v61 }
 0x474   : > { %v1256_v62 = vpop.trf.xlu0 }
 0x475   : > { %1979 = vmatprep.mubr.msk.f32.mxu1 %vm284_vm0, %v1256_v62 }
 0x478   : > { %v1257_v63 = vpop.trf.xlu0 }
 0x479   : > { %1980 = vmatmul.mubr.msk.f32.gmra.mrb[2].mxu1 %vm284_vm0, %v1257_v63 }
 0x47c   : > { %v1258_v0 = vpop.trf.xlu0 }
 0x47d   : > { %1982 = vmatprep.mubr.msk.f32.mxu1 %vm284_vm0, %v1258_v0 }
 0x480   : > { %v1259_v1 = vpop.trf.xlu0 }
 0x481   : > { %1983 = vmatmul.mubr.msk.f32.gmra.mrb[4].mxu1 %vm284_vm0, %v1259_v1 }
 0x484   : > { %v1260_v2 = vpop.trf.xlu0 }
 0x485   : > { %1985 = vmatprep.mubr.msk.f32.mxu1 %vm284_vm0, %v1260_v2 }
 0x488   : > { %v1261_v3 = vpop.trf.xlu0 }
 0x489   : > { %1986 = vmatmul.mubr.msk.f32.gmra.mrb[6].mxu1 %vm284_vm0, %v1261_v3 }
 0x524   : > { %v1966_v5 = vpop.f32.mrb[0].mxu0 }
 0x525   : > { %v1382_v6 = vadd.f32 %v1966_v5, %v1652_v4  ;;  %v1376_v7 = vpop.f32.mrb[1].mxu0 }
 0x526   : > { %v1377_v8 = vadd.f32 %v1652_v4, %v1376_v7 }
 0x527   : > { %1456 = vst.msk [vmem:[%s2275_s7 + $0x8] sm:$0xff] %vm284_vm0, %v1382_v6 }
 0x528   : > { %1455 = vst.msk [vmem:[%s2275_s7] sm:$0xff] %vm284_vm0, %v1377_v8 }
 0x52c   : > { %v1969_v9 = vpop.f32.mrb[2].mxu0 }
 0x52d   : > { %v1392_v10 = vadd.f32 %v1969_v9, %v1652_v4  ;;  %v1386_v11 = vpop.f32.mrb[3].mxu0 }
 0x52e   : > { %v1387_v12 = vadd.f32 %v1652_v4, %v1386_v11 }
 0x52f   : > { %1458 = vst.msk [vmem:[%s2275_s7 + $0x18] sm:$0xff] %vm284_vm0, %v1392_v10 }
 0x530   : > { %1457 = vst.msk [vmem:[%s2275_s7 + $0x10] sm:$0xff] %vm284_vm0, %v1387_v12 }
 0x534   : > { %v1972_v13 = vpop.f32.mrb[4].mxu0 }
 0x535   : > { %v1402_v14 = vadd.f32 %v1972_v13, %v1652_v4  ;;  %v1396_v15 = vpop.f32.mrb[5].mxu0 }
 0x536   : > { %v1397_v16 = vadd.f32 %v1652_v4, %v1396_v15 }
 0x537   : > { %1460 = vst.msk [vmem:[%s2275_s7 + $0x28] sm:$0xff] %vm284_vm0, %v1402_v14 }
 0x538   : > { %1459 = vst.msk [vmem:[%s2275_s7 + $0x20] sm:$0xff] %vm284_vm0, %v1397_v16 }
 0x53c   : > { %v1975_v17 = vpop.f32.mrb[6].mxu0 }
 0x53d   : > { %v1412_v19 = vadd.f32 %v1975_v17, %v1652_v4  ;;  %v1406_v20 = vpop.f32.mrb[7].mxu0 }
 0x53e   : > { %v1407_v21 = vadd.f32 %v1652_v4, %v1406_v20 }
 0x53f   : > { %1462 = vst.msk [vmem:[%s2275_s7 + $0x38] sm:$0xff] %vm284_vm0, %v1412_v19 }
 0x540   : > { %1461 = vst.msk [vmem:[%s2275_s7 + $0x30] sm:$0xff] %vm284_vm0, %v1407_v21 }
 0x544   : > { %v1978_v18 = vpop.f32.mrb[0].mxu1 }
 0x545   : > { %v1422_v22 = vadd.f32 %v1978_v18, %v1652_v4  ;;  %v1416_v23 = vpop.f32.mrb[1].mxu1 }
 0x546   : > { %v1417_v24 = vadd.f32 %v1652_v4, %v1416_v23 }
 0x547   : > { %1464 = vst.msk [vmem:[%s2275_s7 + $0x48] sm:$0xff] %vm284_vm0, %v1422_v22 }
 0x548   : > { %1463 = vst.msk [vmem:[%s2275_s7 + $0x40] sm:$0xff] %vm284_vm0, %v1417_v24 }
 0x54c   : > { %v1981_v25 = vpop.f32.mrb[2].mxu1 }
 0x54d   : > { %v1432_v26 = vadd.f32 %v1981_v25, %v1652_v4  ;;  %v1426_v27 = vpop.f32.mrb[3].mxu1 }
 0x54e   : > { %v1427_v28 = vadd.f32 %v1652_v4, %v1426_v27 }
 0x54f   : > { %1466 = vst.msk [vmem:[%s2275_s7 + $0x58] sm:$0xff] %vm284_vm0, %v1432_v26 }
 0x550   : > { %1465 = vst.msk [vmem:[%s2275_s7 + $0x50] sm:$0xff] %vm284_vm0, %v1427_v28 }
 0x554   : > { %v1984_v29 = vpop.f32.mrb[4].mxu1 }
 0x555   : > { %v1442_v30 = vadd.f32 %v1984_v29, %v1652_v4  ;;  %v1436_v31 = vpop.f32.mrb[5].mxu1 }
 0x556   : > { %v1437_v32 = vadd.f32 %v1652_v4, %v1436_v31 }
 0x557   : > { %1468 = vst.msk [vmem:[%s2275_s7 + $0x68] sm:$0xff] %vm284_vm0, %v1442_v30 }
 0x558   : > { %1467 = vst.msk [vmem:[%s2275_s7 + $0x60] sm:$0xff] %vm284_vm0, %v1437_v32 }
 0x55c   : > { %v1987_v33 = vpop.f32.mrb[6].mxu1 }
 0x55d   : > { %v1452_v34 = vadd.f32 %v1987_v33, %v1652_v4  ;;  %v1446_v35 = vpop.f32.mrb[7].mxu1 }
 0x55e   : > { %v1447_v36 = vadd.f32 %v1652_v4, %v1446_v35 }
 0x55f   : > { %1470 = vst.msk [vmem:[%s2275_s7 + $0x78] sm:$0xff] %vm284_vm0, %v1452_v34 }
 0x560   : > { %1469 = vst.msk [vmem:[%s2275_s7 + $0x70] sm:$0xff] %vm284_vm0, %v1447_v36 }
 0x561 PF: > { %s15_s20 = sadd.s32 1, %s2202_s20   ;;  %s2585_s18 = smov %s2198_s19 }
 0x562   : > { %p12_p6 = scmp.ge.s32.totalorder %s15_s20, 4   ;;  %s2586_s19 = smov %s2588_s21 }
 0x564   :  { %14 = sbr.rel (!%p12_p6) target bundleno = 2 (0x2), region = 97 }

</bundles_post_ra>
